<compile_context>
chip_gen: v7x
topology: tpu7x:2x2x1
jax: 0.10.0
libtpu: 0.0.40
codegen_flags: <defaults>
</compile_context>

<pallas_src>
import functools
import math

import numpy as np

import jax
import jax.numpy as jnp
from jax import lax
from jax.experimental import pallas as pl
from jax.experimental.pallas import tpu as pltpu


# -----------------------------------------------------------------------------
# Tiling / VMEM budgets
# -----------------------------------------------------------------------------
_VMEM_LIMIT_BYTES = 40 << 20   # scoped VMEM for the pallas_call (under 64 MiB v7x)
_VMEM_PIPE_BUDGET = 24 << 20   # budget for the double-buffered pipeline streams
_MIN_SPLIT_BYTES = 512 << 10   # only split into >=2 parallel steps if each step
                               # still streams >= 512 KiB (amortize ~0.35 us/step)
_MAX_FLAT_QK = 1024            # largest Q*K handled by the flattened MXU path


def _cdiv(a, b):
    return -(-a // b)


def _round_up(x, m):
    return ((x + m - 1) // m) * m


def _pick_row_block(n_rows, max_rows, bytes_per_row):
    """Largest block that fits the budget; >=2 balanced 'parallel' steps when
    each step stays big enough (megacore / v7x)."""
    min_split_rows = max(8, _MIN_SPLIT_BYTES // max(1, bytes_per_row))
    if n_rows <= max_rows:
        if n_rows >= 2 * min_split_rows:
            return _round_up(_cdiv(n_rows, 2), 8)
        return n_rows                      # single step == full array dim
    n_steps = _cdiv(n_rows, max_rows)
    return _round_up(_cdiv(n_rows, n_steps), 8)


# -----------------------------------------------------------------------------
# Segment matrices (built once per compiled forward, resident in VMEM)
# -----------------------------------------------------------------------------
def _seg_full(width, K):
    # seg[a, b] = 1 iff lanes a and b belong to the same K-wide key segment.
    idx = np.arange(width) // K
    return jnp.asarray((idx[:, None] == idx[None, :]).astype(np.float32))


def _seg_factors(QK, Q, K):
    # One-hot (QK, Q): position -> query row; and its transpose (Q, QK).
    q_of = np.arange(QK) // K
    a = (q_of[:, None] == np.arange(Q)[None, :]).astype(np.float32)
    return jnp.asarray(a), jnp.asarray(np.ascontiguousarray(a.T))


# -----------------------------------------------------------------------------
# Kernels
# -----------------------------------------------------------------------------
def _packed_mask_kernel(x_ref, bias_ref, seg_ref, o_ref, *, K, inv_ramp):
    # x_ref: (rows, 128) lane-packed attention; bias_ref: (rows, 1) folded bias.
    x = x_ref[...].astype(jnp.float32)
    width = x_ref.shape[-1]
    keypos = (lax.broadcasted_iota(jnp.int32, (1, width), 1) % K).astype(jnp.float32)
    mask = jnp.clip(keypos * inv_ramp + bias_ref[...], 0.0, 1.0)
    x = x * mask
    denom = jnp.dot(x, seg_ref[...], preferred_element_type=jnp.float32) + 1e-8
    o_ref[...] = (x * pl.reciprocal(denom, approx=False)).astype(o_ref.dtype)


def _packed_norm_kernel(x_ref, seg_ref, o_ref):
    x = x_ref[...].astype(jnp.float32)
    denom = jnp.dot(x, seg_ref[...], preferred_element_type=jnp.float32) + 1e-8
    o_ref[...] = (x * pl.reciprocal(denom, approx=False)).astype(o_ref.dtype)


def _flat_mask_kernel(x_ref, bias_ref, sega_ref, segb_ref, o_ref, *, K, inv_ramp):
    # x_ref: (rows, Q*K); per-query sums via two skinny MXU matmuls.
    x = x_ref[...].astype(jnp.float32)
    width = x_ref.shape[-1]
    keypos = (lax.broadcasted_iota(jnp.int32, (1, width), 1) % K).astype(jnp.float32)
    mask = jnp.clip(keypos * inv_ramp + bias_ref[...], 0.0, 1.0)
    x = x * mask
    qsum = jnp.dot(x, sega_ref[...], preferred_element_type=jnp.float32)       # (rows, Q)
    denom = jnp.dot(qsum, segb_ref[...], preferred_element_type=jnp.float32) + 1e-8
    o_ref[...] = (x * pl.reciprocal(denom, approx=False)).astype(o_ref.dtype)


def _flat_norm_kernel(x_ref, sega_ref, segb_ref, o_ref):
    x = x_ref[...].astype(jnp.float32)
    qsum = jnp.dot(x, sega_ref[...], preferred_element_type=jnp.float32)
    denom = jnp.dot(qsum, segb_ref[...], preferred_element_type=jnp.float32) + 1e-8
    o_ref[...] = (x * pl.reciprocal(denom, approx=False)).astype(o_ref.dtype)


def _rowsum_mask_kernel(x_ref, bias_ref, o_ref, *, K, inv_ramp):
    # Last-resort lane-sparse path (huge Q*K with K not dividing 128).
    x = x_ref[...].astype(jnp.float32)
    keypos = lax.broadcasted_iota(jnp.int32, (1, 1, K), 2).astype(jnp.float32)
    mask = jnp.clip(keypos * inv_ramp + bias_ref[...], 0.0, 1.0)
    x = x * mask
    denom = jnp.sum(x, axis=-1, keepdims=True) + 1e-8
    o_ref[...] = (x * pl.reciprocal(denom, approx=False)).astype(o_ref.dtype)


def _rowsum_norm_kernel(x_ref, o_ref):
    x = x_ref[...].astype(jnp.float32)
    denom = jnp.sum(x, axis=-1, keepdims=True) + 1e-8
    o_ref[...] = (x * pl.reciprocal(denom, approx=False)).astype(o_ref.dtype)


# -----------------------------------------------------------------------------
# Cached builders: one jitted forward per static (shape, dtype, apply_mask, ramp)
# -----------------------------------------------------------------------------
@functools.lru_cache(maxsize=None)
def _make_forward(B, H, Q, K, dtype_name, apply_mask, ramp):
    dtype = jnp.dtype(dtype_name)
    BH, QK = B * H, Q * K
    inv_ramp = 1.0 / float(ramp)
    bias_const = 1.0 - (K - 1) * inv_ramp   # mask = clip(keypos/ramp + cv*K/ramp + bias_const)

    def _cv_bias(current_val):
        # current_val: (bs, nb_heads, 1, 1); apply_mask guarantees bs == B.
        cv = jnp.broadcast_to(current_val[:, :, 0, 0], (B, H)).reshape(BH)
        return cv.astype(jnp.float32) * (K * inv_ramp) + bias_const

    packable = (K <= 128) and (128 % K == 0) and (QK % 128 == 0)
    use_flat = (not packable) and (QK <= _MAX_FLAT_QK)

    if packable or use_flat:
        width = 128 if packable else QK
        n_rows = (BH * QK) // width
        reps = QK // width if packable else 1     # bias repeats per (b, h) head

        # Per-row VMEM of double-buffered streams: x + out (width lanes each)
        # and, with mask, a bias column padded to 128 lanes. Seg matrices are
        # small residents (<= ~400 KiB) -> 1 MiB reserve.
        row_bytes = 2 * (2 * width + (128 if apply_mask else 0)) * 4
        max_rows = max(8, (_VMEM_PIPE_BUDGET - (1 << 20)) // row_bytes)
        row_block = _pick_row_block(n_rows, max_rows, row_bytes // 2)
        grid = (_cdiv(n_rows, row_block),)

        if packable:
            seg_consts = (_seg_full(width, K),)
            seg_specs = [pl.BlockSpec((width, width), lambda i: (0, 0))]
            kernel = (functools.partial(_packed_mask_kernel, K=K, inv_ramp=inv_ramp)
                      if apply_mask else _packed_norm_kernel)
        else:
            sega, segb = _seg_factors(QK, Q, K)
            seg_consts = (sega, segb)
            seg_specs = [pl.BlockSpec((QK, Q), lambda i: (0, 0)),
                         pl.BlockSpec((Q, QK), lambda i: (0, 0))]
            kernel = (functools.partial(_flat_mask_kernel, K=K, inv_ramp=inv_ramp)
                      if apply_mask else _flat_norm_kernel)

        in_specs = [pl.BlockSpec((row_block, width), lambda i: (i, 0))]
        if apply_mask:
            in_specs.append(pl.BlockSpec((row_block, 1), lambda i: (i, 0)))
        in_specs.extend(seg_specs)

        # TODO(synk): add input_output_aliases={0: 0} when the caller donates attn.
        call = pl.pallas_call(
            kernel,
            out_shape=jax.ShapeDtypeStruct((n_rows, width), dtype),
            grid_spec=pltpu.PrefetchScalarGridSpec(
                num_scalar_prefetch=0,
                grid=grid,
                in_specs=in_specs,
                out_specs=pl.BlockSpec((row_block, width), lambda i: (i, 0)),
            ),
            compiler_params=pltpu.CompilerParams(
                dimension_semantics=("parallel",),
                vmem_limit_bytes=_VMEM_LIMIT_BYTES),
        )

        def fwd(attn, current_val):
            x = attn.reshape(n_rows, width)          # contiguous, lane-dense
            args = [x]
            if apply_mask:
                bias = _cv_bias(current_val)
                if reps > 1:
                    bias = jnp.repeat(bias, reps)
                args.append(bias.reshape(n_rows, 1))
            args.extend(seg_consts)
            return call(*args).reshape(B, H, Q, K)

        return jax.jit(fwd)

    # ---- last-resort lane-sparse path (huge Q*K with K not dividing 128) ----
    # TODO(synk): lane-dense repacking for this regime (rare: huge Q*K, odd K).
    qk_pad = _round_up(Q, 8) * _round_up(K, 128)
    row_bytes = 2 * 2 * qk_pad * 4 + (2 * 8 * 128 * 4 if apply_mask else 0)
    max_rows = max(1, _VMEM_PIPE_BUDGET // row_bytes)
    bh_block = _pick_row_block(BH, max_rows, row_bytes // 2)
    grid = (_cdiv(BH, bh_block),)

    in_specs = [pl.BlockSpec((bh_block, Q, K), lambda i: (i, 0, 0))]
    if apply_mask:
        in_specs.append(pl.BlockSpec((bh_block, 1, 1), lambda i: (i, 0, 0)))
        kernel = functools.partial(_rowsum_mask_kernel, K=K, inv_ramp=inv_ramp)
    else:
        kernel = _rowsum_norm_kernel

    call = pl.pallas_call(
        kernel,
        out_shape=jax.ShapeDtypeStruct((BH, Q, K), dtype),
        grid_spec=pltpu.PrefetchScalarGridSpec(
            num_scalar_prefetch=0,
            grid=grid,
            in_specs=in_specs,
            out_specs=pl.BlockSpec((bh_block, Q, K), lambda i: (i, 0, 0)),
        ),
        compiler_params=pltpu.CompilerParams(
            dimension_semantics=("parallel",),
            vmem_limit_bytes=_VMEM_LIMIT_BYTES),
    )

    def fwd(attn, current_val):
        x = attn.reshape(BH, Q, K)
        args = [x]
        if apply_mask:
            args.append(_cv_bias(current_val).reshape(BH, 1, 1))
        return call(*args).reshape(B, H, Q, K)

    return jax.jit(fwd)


# -----------------------------------------------------------------------------
# Python-side module replacement
# -----------------------------------------------------------------------------
class AdaptiveSpanPallas:
    def __init__(self, attn_span, adapt_span_loss_coeff, adapt_span_ramp,
                 adapt_span_init, adapt_span_cache, nb_heads, bs, mask_size,
                 key=None):
        self.attn_span = attn_span
        self.ramp_size = adapt_span_ramp
        self.bs = bs
        self.nb_heads = nb_heads
        self.init_val = adapt_span_init
        self.adapt_cache = adapt_span_cache
        self.loss_coeff = adapt_span_loss_coeff
        self.mask_size = list(mask_size)

        if key is None:
            key = jax.random.PRNGKey(0)
        # kaiming_normal_ on (bs, nb_heads, 1, 1): fan_in = nb_heads, gain = sqrt(2)
        std = math.sqrt(2.0 / nb_heads)
        self.current_val = (
            jax.random.normal(key, (bs, nb_heads, 1, 1), dtype=jnp.float32) * std
            + jnp.float32(adapt_span_init))

    # -- utility parity with the PyTorch module (host-side scalar math) ------
    def clamp_param(self):
        self.current_val = jnp.clip(self.current_val, 0.0, 1.0)

    def get_loss(self):
        return self.loss_coeff * self.attn_span * jnp.mean(self.current_val)

    def get_current_avg_span(self, include_ramp=True):
        size = math.ceil(float(jnp.mean(self.current_val)) * self.attn_span)
        if include_ramp:
            size += self.ramp_size
        return max(0, min(self.attn_span, size))

    def get_current_max_span(self, include_ramp=True):
        size = math.ceil(float(jnp.max(self.current_val)) * self.attn_span)
        if include_ramp:
            size += self.ramp_size
        return max(0, min(self.attn_span, size))

    def get_trim_len(self):
        L = self.attn_span
        trim_len = min(L - 1, L - self.get_current_max_span())
        return math.floor(trim_len / 64) * 64

    def get_cache_size(self):
        if self.adapt_cache:
            return min(self.attn_span, self.attn_span - self.get_trim_len() + 64)
        return self.attn_span

    # -- forward --------------------------------------------------------------
    def __call__(self, attn):
        B, H, Q, K = attn.shape
        apply_mask = (B == self.bs)          # PyTorch guard: x.size(0) == mask.size(0)
        if apply_mask and not (H == self.nb_heads or self.nb_heads == 1):
            raise ValueError(
                f"heads mismatch: attn has H={H} but current_val has "
                f"nb_heads={self.nb_heads} (not broadcastable)")
        fwd = _make_forward(B, H, Q, K, jnp.dtype(attn.dtype).name,
                            apply_mask, float(self.ramp_size))
        return fwd(attn, self.current_val)

    # -- pure-JAX reference (for verification only) ---------------------------
    def reference(self, attn):
        B, H, Q, K = attn.shape
        x = attn
        if B == self.bs:
            tmpl = jnp.arange(K, dtype=jnp.float32) - jnp.float32(K - 1)
            mask = (tmpl + self.current_val * K) / self.ramp_size + 1.0
            mask = jnp.clip(mask, 0.0, 1.0)
            x = x * mask
        return x / (jnp.sum(x, axis=-1, keepdims=True) + 1e-8)


# -----------------------------------------------------------------------------
if __name__ == "__main__":
    config = dict(
        attn_span=64,
        adapt_span_loss_coeff=5e-6,
        adapt_span_ramp=8,
        adapt_span_init=0.002,
        adapt_span_cache=True,
        nb_heads=4,
        bs=2,
        mask_size=[16, 32],
    )
    module = AdaptiveSpanPallas(**config, key=jax.random.PRNGKey(0))

    key = jax.random.PRNGKey(0)
    k1, k2, k3, k4 = jax.random.split(key, 4)
    # attention-weight-like inputs (B, H, Q, K)
    x0 = jax.nn.softmax(jax.random.normal(k1, (2, 4, 8, 32), jnp.float32), axis=-1)  # packed + mask
    x1 = jax.nn.softmax(jax.random.normal(k2, (2, 4, 8, 16), jnp.float32), axis=-1)  # packed + mask
    x2 = jax.nn.softmax(jax.random.normal(k3, (1, 4, 8, 32), jnp.float32), axis=-1)  # B != bs: normalize only

    # Flattened (BH, Q*K) MXU path: paper-style mask size (K=20 does not divide 128)
    module2 = AdaptiveSpanPallas(**{**config, "mask_size": [20, 36]},
                                 key=jax.random.PRNGKey(1))
    x3 = jax.nn.softmax(jax.random.normal(k4, (2, 4, 26, 20), jnp.float32), axis=-1)

    ok = True
    for m, x in ((module, x0), (module, x1), (module, x2), (module2, x3)):
        out = m(x)
        jax.block_until_ready(out)
        ref = m.reference(x)
        ok &= bool(jnp.allclose(out, ref, atol=1e-5, rtol=1e-5))

    if ok:
        print("KERNEL_OK")
    else:
        print("MISMATCH")
</pallas_src>

<mosaic_0001>
module attributes {stable_mosaic.version = 11 : i64} {
  func.func @_packed_mask_kernel(%arg0: i32, %arg1: memref<16x128xf32, #tpu.memory_space<vmem>>, %arg2: memref<16x1xf32, #tpu.memory_space<vmem>>, %arg3: memref<128x128xf32, #tpu.memory_space<vmem>>, %arg4: memref<16x128xf32, #tpu.memory_space<vmem>>) attributes {dimension_semantics = [#tpu.dimension_semantics<parallel>], iteration_bounds = array<i64: 1>, scalar_prefetch = 0 : i64, scratch_operands = 0 : i64, tpu.core_type = #tpu.core_type<tc>, window_params = [{transform_indices = @transform_0, window_bounds = array<i64: 16, 128>}, {transform_indices = @transform_1, window_bounds = array<i64: 16, 1>}, {pipeline_mode = #tpu.pipeline_mode<synchronous>, transform_indices = @transform_2, window_bounds = array<i64: 128, 128>}, {transform_indices = @transform_3, window_bounds = array<i64: 16, 128>}]} {
    %c0 = arith.constant 0 : index
    %c0_0 = arith.constant 0 : index
    %0 = vector.load %arg1[%c0, %c0_0] : memref<16x128xf32, #tpu.memory_space<vmem>>, vector<16x128xf32>
    %1 = tpu.iota {dimensions = array<i32: 1>} : vector<1x128xi32>
    %c32_i32 = arith.constant 32 : i32
    %c0_i32 = arith.constant 0 : i32
    %2 = arith.cmpi eq, %c32_i32, %c0_i32 : i32
    %c1_i32 = arith.constant 1 : i32
    %3 = arith.select %2, %c1_i32, %c32_i32 : i32
    %4 = vector.broadcast %3 : i32 to vector<1x128xi32>
    %5 = arith.remsi %1, %4 : vector<1x128xi32>
    %c0_i32_1 = arith.constant 0 : i32
    %6 = vector.broadcast %c0_i32_1 : i32 to vector<1x128xi32>
    %7 = arith.cmpi ne, %5, %6 : vector<1x128xi32>
    %c0_i32_2 = arith.constant 0 : i32
    %8 = vector.broadcast %c0_i32_2 : i32 to vector<1x128xi32>
    %9 = arith.cmpi slt, %5, %8 : vector<1x128xi32>
    %c0_i32_3 = arith.constant 0 : i32
    %10 = arith.cmpi slt, %3, %c0_i32_3 : i32
    %11 = vector.broadcast %10 : i1 to vector<1x128xi1>
    %12 = vector.broadcast %11 : vector<1x128xi1> to vector<1x128xi1>
    %13 = arith.xori %9, %12 : vector<1x128xi1>
    %14 = arith.andi %13, %7 : vector<1x128xi1>
    %15 = vector.broadcast %3 : i32 to vector<1x128xi32>
    %16 = arith.addi %5, %15 : vector<1x128xi32>
    %17 = arith.select %14, %16, %5 : vector<1x128xi1>, vector<1x128xi32>
    %18 = arith.sitofp %17 : vector<1x128xi32> to vector<1x128xf32>
    %cst = arith.constant 1.250000e-01 : f32
    %19 = vector.broadcast %cst : f32 to vector<1x128xf32>
    %20 = arith.mulf %18, %19 : vector<1x128xf32>
    %c0_4 = arith.constant 0 : index
    %c0_5 = arith.constant 0 : index
    %21 = vector.load %arg2[%c0_4, %c0_5] : memref<16x1xf32, #tpu.memory_space<vmem>>, vector<16x1xf32>
    %22 = vector.broadcast %20 : vector<1x128xf32> to vector<16x128xf32>
    %23 = vector.broadcast %21 : vector<16x1xf32> to vector<16x128xf32>
    %24 = arith.addf %22, %23 : vector<16x128xf32>
    %cst_6 = arith.constant 0.000000e+00 : f32
    %cst_7 = arith.constant 1.000000e+00 : f32
    %25 = vector.broadcast %cst_6 : f32 to vector<16x128xf32>
    %26 = arith.maximumf %25, %24 : vector<16x128xf32>
    %27 = vector.broadcast %cst_7 : f32 to vector<16x128xf32>
    %28 = arith.minimumf %27, %26 : vector<16x128xf32>
    %29 = arith.mulf %0, %28 : vector<16x128xf32>
    %c0_8 = arith.constant 0 : index
    %c0_9 = arith.constant 0 : index
    %30 = vector.load %arg3[%c0_8, %c0_9] : memref<128x128xf32, #tpu.memory_space<vmem>>, vector<128x128xf32>
    %cst_10 = arith.constant dense<0.000000e+00> : vector<16x128xf32>
    %31 = tpu.matmul %29, %30, %cst_10 {dimension_numbers = #tpu.dot_dimension_numbers<[1], [0], [0], [1], [0, 0, 1, 1], [], []>} : vector<16x128xf32>, vector<128x128xf32>, vector<16x128xf32> -> vector<16x128xf32>
    %cst_11 = arith.constant 9.99999993E-9 : f32
    %32 = vector.broadcast %cst_11 : f32 to vector<16x128xf32>
    %33 = arith.addf %31, %32 : vector<16x128xf32>
    %34 = tpu.reciprocal %33 : vector<16x128xf32> -> vector<16x128xf32>
    %35 = arith.mulf %29, %34 : vector<16x128xf32>
    %c0_12 = arith.constant 0 : index
    %c0_13 = arith.constant 0 : index
    %36 = vector.load %arg4[%c0_12, %c0_13] : memref<16x128xf32, #tpu.memory_space<vmem>>, vector<16x128xf32>
    tpu.vector_store %arg4[%c0_12, %c0_13], %35 {strides = array<i32>} : memref<16x128xf32, #tpu.memory_space<vmem>>, vector<16x128xf32>,
    return
  }
  func.func @transform_0(%arg0: i32) -> (i32, i32) {
    %c0_i32 = arith.constant 0 : i32
    %c0_i32_0 = arith.constant 0 : i32
    return %arg0, %c0_i32 : i32, i32
  }
  func.func @transform_1(%arg0: i32) -> (i32, i32) {
    %c0_i32 = arith.constant 0 : i32
    %c0_i32_0 = arith.constant 0 : i32
    return %arg0, %c0_i32 : i32, i32
  }
  func.func @transform_2(%arg0: i32) -> (i32, i32) {
    %c0_i32 = arith.constant 0 : i32
    %c0_i32_0 = arith.constant 0 : i32
    %c0_i32_1 = arith.constant 0 : i32
    return %c0_i32, %c0_i32_0 : i32, i32
  }
  func.func @transform_3(%arg0: i32) -> (i32, i32) {
    %c0_i32 = arith.constant 0 : i32
    %c0_i32_0 = arith.constant 0 : i32
    return %arg0, %c0_i32 : i32, i32
  }
}

</mosaic_0001>

<bundles_post_ra>
// kernel: fwd.1
= control target key start
LH: loop header
LB: loop body
LE: loop exit
PB: predicated region body
PF: predicated region fallthrough
CT: control target
= control target key end

     0   :  { %v244_v0 = vmov 0   ;;  %v16_v27 = vlaneseq  ;;  %s331_s1 = inlined_call_operand.vmem [shape: f32[16,1], index: 1, kind: input, shape index: {}]   ;;  %s332_s2 = inlined_call_operand.vmem [shape: f32[128,128], index: 2, kind: input, shape index: {}]   ;;  %s333_s0 = inlined_call_operand.vmem [shape: f32[16,128], index: 0, kind: input, shape index: {}]   ;;  %s334_s3 = inlined_call_operand.vmem [shape: f32[16,128], index: 3, kind: output, shape index: {}]  }
   0x1   :  { %239 = vset.pattern.permute.xlu0 %v244_v0  ;;  %v32_v1 = vld [vmem:[%s331_s1] sm:$0xff]  ;;  %v53_v3 = vld [vmem:[%s332_s2 + $0x8] sm:$0xff]  ;;  %v54_v4 = vld [vmem:[%s332_s2 + $0x10] sm:$0xff] }
   0x2   :  { %v52_v2 = vld [vmem:[%s332_s2] sm:$0xff]  ;;  %36 = vperm.xlu0 %239, %v32_v1   ;;  %v55_v5 = vld [vmem:[%s332_s2 + $0x18] sm:$0xff]  ;;  %v33_v6 = vld [vmem:[%s331_s1 + $0x8] sm:$0xff]  ;;  %v17_v28 = vand.u32 127, %v16_v27 }
   0x3   :  { %v206_v7 = vpack.c.bf16 %v53_v3, %v52_v2  ;;  %v210_v8 = vpack.c.bf16 %v55_v5, %v54_v4  ;;  %v56_v9 = vld [vmem:[%s332_s2 + $0x20] sm:$0xff]  ;;  %v57_v10 = vld [vmem:[%s332_s2 + $0x28] sm:$0xff]  ;;  %v58_v12 = vld [vmem:[%s332_s2 + $0x30] sm:$0xff] }
   0x4   :  { %v214_v11 = vpack.c.bf16 %v57_v10, %v56_v9  ;;  %v59_v13 = vld [vmem:[%s332_s2 + $0x38] sm:$0xff]  ;;  %v60_v15 = vld [vmem:[%s332_s2 + $0x40] sm:$0xff]  ;;  %v61_v16 = vld [vmem:[%s332_s2 + $0x48] sm:$0xff]  ;;  %v22_v29 = vand.u32 31, %v17_v28 }
   0x5   :  { %207 = vmatprep.subr.bf16.mxu0 %v206_v7  ;;  %v218_v14 = vpack.c.bf16 %v59_v13, %v58_v12  ;;  %v222_v17 = vpack.c.bf16 %v61_v16, %v60_v15  ;;  %v62_v18 = vld [vmem:[%s332_s2 + $0x50] sm:$0xff]  ;;  %v63_v19 = vld [vmem:[%s332_s2 + $0x58] sm:$0xff]  ;;  %v64_v21 = vld [vmem:[%s332_s2 + $0x60] sm:$0xff] }
   0x6   :  { %41 = vperm.xlu0 %239, %v33_v6   ;;  %209 = vmatpush3.bf16.msra.mxu0 %v206_v7  ;;  %v226_v20 = vpack.c.bf16 %v63_v19, %v62_v18  ;;  %v65_v22 = vld [vmem:[%s332_s2 + $0x68] sm:$0xff]  ;;  %v66_v24 = vld [vmem:[%s332_s2 + $0x70] sm:$0xff]  ;;  %v67_v25 = vld [vmem:[%s332_s2 + $0x78] sm:$0xff]  ;;  %v30_v30 = vcvt.s32.f32 %v22_v29 }
   0x7   :  { %211 = vmatprep.subr.bf16.mxu0 %v210_v8  ;;  %v230_v23 = vpack.c.bf16 %v65_v22, %v64_v21  ;;  %v234_v26 = vpack.c.bf16 %v67_v25, %v66_v24  ;;  %v14_v36 = vld [vmem:[%s333_s0] sm:$0xff]  ;;  %v15_v41 = vld [vmem:[%s333_s0 + $0x8] sm:$0xff] }
   0x8   :  { %v31_v31 = vmul.f32 0.125, %v30_v30 }
   0xa   :  { %213 = vmatpush3.bf16.msra.mxu0 %v210_v8 }
   0xb   :  { %215 = vmatprep.subr.bf16.mxu0 %v214_v11 }
   0xe   :  { %217 = vmatpush3.bf16.msra.mxu0 %v214_v11 }
   0xf   :  { %219 = vmatprep.subr.bf16.mxu0 %v218_v14 }
  0x12   :  { %221 = vmatpush3.bf16.msra.mxu0 %v218_v14 }
  0x13   :  { %223 = vmatprep.subr.bf16.mxu0 %v222_v17 }
  0x16   :  { %225 = vmatpush3.bf16.msra.mxu0 %v222_v17 }
  0x17   :  { %227 = vmatprep.subr.bf16.mxu0 %v226_v20 }
  0x1a   :  { %229 = vmatpush3.bf16.msra.mxu0 %v226_v20 }
  0x1b   :  { %231 = vmatprep.subr.bf16.mxu0 %v230_v23 }
  0x1e   :  { %233 = vmatpush3.bf16.msra.mxu0 %v230_v23 }
  0x1f   :  { %235 = vmatprep.subr.bf16.mxu0 %v234_v26 }
  0x22   :  { %237 = vmatpush3.bf16.msra.mxu0 %v234_v26 }
  0x81   :  { %v37_v32 = vpop.permute.xlu0 %36 }
  0x82   :  { %v44_v33 = vadd.f32 %v37_v32, %v31_v31 }
  0x84   :  { %v46_v34 = vmax.f32 %v44_v33, 0.0 }
  0x85   :  { %v42_v35 = vpop.permute.xlu0 %41 }
  0x86   :  { %v48_v37 = vmin.f32 %v46_v34, 1.0  ;;  %v45_v38 = vadd.f32 %v42_v35, %v31_v31 }
  0x88   :  { %v47_v39 = vmax.f32 %v45_v38, 0.0  ;;  %v50_v40 = vmul.f32 %v48_v37, %v14_v36 }
  0x8a   :  { %v49_v42 = vmin.f32 %v47_v39, 1.0  ;;  %203 = vmatprep.mubr.f32.mxu0 %v50_v40 }
  0x8c   :  { %v51_v43 = vmul.f32 %v49_v42, %v15_v41 }
  0x8e   :  { %204 = vmatmul.mubr.f32.vlgmr.msra.gmra.mrb[0].mxu0 %v51_v43 }
 0x161   :  { %v205_v44 = vpop.f32.mrb[0].mxu0 }
 0x162   :  { %v140_v45 = vadd.f32 1e-08, %v205_v44  ;;  %v134_v46 = vpop.f32.mrb[1].mxu0 }
 0x163   :  { %v135_v47 = vadd.f32 1e-08, %v134_v46 }
 0x164   :  { %240 = vrcp.f32 %v140_v45 }
 0x165   :  { %242 = vrcp.f32 %v135_v47 }
 0x16e   :  { %v241_v48 = vpop.eup %240 }
 0x16f   :  { %v243_v49 = vpop.eup %242  ;;  %v146_v50 = vmul.f32 %v241_v48, %v51_v43 }
 0x170   :  { %v145_v51 = vmul.f32 %v243_v49, %v50_v40 }
 0x171   :  { %148 = vst [vmem:[%s334_s3 + $0x8] sm:$0xff] %v146_v50 }
 0x172   :  { %147 = vst [vmem:[%s334_s3] sm:$0xff] %v145_v51 }

</bundles_post_ra>
